<compile_context>
chip_gen: v6e
topology: v6e:2x2x1
jax: 0.10.0
libtpu: 0.0.40
codegen_flags: <defaults>
</compile_context>

<pallas_src>
import functools

import jax
import jax.numpy as jnp
from jax.experimental import pallas as pl
from jax.experimental.pallas import tpu as pltpu


def _round_up(x, m):
    return ((x + m - 1) // m) * m


def _ceil_div(a, b):
    return -(-a // b)


def _tpu_kind():
    try:
        return jax.devices()[0].device_kind.lower()
    except Exception:
        return ""


def _choose_block_rows(batch, row_bytes, *, min_align, target_bytes, min_tiles):
    """Batch-tile height: ~target_bytes of f32 working tile, sublane-aligned."""
    b_al = _round_up(batch, min_align)
    rows = target_bytes // max(1, row_bytes)
    rows = max(min_align, (rows // min_align) * min_align)
    if rows >= b_al:
        # Whole (padded) batch fits in one tile.  On v7x split anyway so both
        # TensorCores get grid steps to work on.
        if min_tiles > 1 and b_al >= 2 * min_align:
            split = _round_up(_ceil_div(b_al, min_tiles), min_align)
            if split < b_al:
                return split
        return b_al
    # Multi-tile: balance tiles; round to the sublane packing (8 f32 / 16 bf16),
    # NOT to 128, so large-K blocks are not inflated.
    num_tiles = max(_ceil_div(b_al, rows), min_tiles)
    rows = _round_up(_ceil_div(b_al, num_tiles), min_align)
    return min(rows, b_al)


def _ce_full_k_kernel(x_ref, t_ref, loss_ref, *, epsilon, num_classes):
    """Full class axis in one block.  x_ref: (TB, K), t_ref/loss_ref: (TB, 1)."""
    tb, k = x_ref.shape
    t = t_ref[...]                                               # (TB, 1) int32
    class_ids = jax.lax.broadcasted_iota(jnp.int32, (tb, k), 1)

    # Fused reductions on raw x; cast inside each expression so no full (TB, K)
    # f32 temporary stays live across the body (important for bf16 inputs).
    x_max = jnp.max(x_ref[...].astype(jnp.float32), axis=-1, keepdims=True)
    log_z = jnp.log(jnp.sum(jnp.exp(x_ref[...].astype(jnp.float32) - x_max),
                            axis=-1, keepdims=True))
    sum_x = jnp.sum(x_ref[...].astype(jnp.float32), axis=-1, keepdims=True)
    tgt_x = jnp.sum(jnp.where(class_ids == t,
                              x_ref[...].astype(jnp.float32), 0.0),
                    axis=-1, keepdims=True)

    lse = x_max + log_z                                          # (TB, 1)
    tgt_logp = tgt_x - lse
    sum_logp = sum_x - jnp.float32(k) * lse                      # k == num_classes here
    loss_ref[...] = (-(1.0 - epsilon) * tgt_logp
                     - (epsilon / float(num_classes)) * sum_logp)


def _ce_split_k_kernel(x_ref, t_ref, loss_ref, m_sc, l_sc, sx_sc, tx_sc,
                       *, epsilon, num_classes):
    """Online logsumexp over K tiles.  Grid: (batch tiles, K tiles); K last, 'arbitrary'."""
    kt = pl.program_id(1)
    tb, tk = x_ref.shape

    @pl.when(kt == 0)
    def _():
        m_sc[...] = jnp.full_like(m_sc, -1e30)     # finite "-inf" avoids inf-inf NaNs
        l_sc[...] = jnp.zeros_like(l_sc)
        sx_sc[...] = jnp.zeros_like(sx_sc)
        tx_sc[...] = jnp.zeros_like(tx_sc)

    t = t_ref[...]                                               # (TB, 1) int32
    gcol = kt * tk + jax.lax.broadcasted_iota(jnp.int32, (tb, tk), 1)
    valid = gcol < num_classes                                   # mask padded class cols

    x_f = x_ref[...].astype(jnp.float32)                         # one (TB, TK) K-tile
    x_m = jnp.where(valid, x_f, -1e30)

    m_new = jnp.maximum(m_sc[...], jnp.max(x_m, axis=-1, keepdims=True))
    alpha = jnp.exp(m_sc[...] - m_new)
    l_sc[...] = alpha * l_sc[...] + jnp.sum(jnp.exp(x_m - m_new),
                                            axis=-1, keepdims=True)
    m_sc[...] = m_new
    sx_sc[...] += jnp.sum(jnp.where(valid, x_f, 0.0), axis=-1, keepdims=True)
    tx_sc[...] += jnp.sum(jnp.where(gcol == t, x_f, 0.0), axis=-1, keepdims=True)

    @pl.when(kt == pl.num_programs(1) - 1)
    def _():
        lse = m_sc[...] + jnp.log(l_sc[...])
        tgt_logp = tx_sc[...] - lse
        sum_logp = sx_sc[...] - jnp.float32(num_classes) * lse
        loss_ref[...] = (-(1.0 - epsilon) * tgt_logp
                         - (epsilon / float(num_classes)) * sum_logp)


def cross_entropy_label_smooth(inputs, targets, *, num_classes, epsilon=0.1,
                               reduction=True, block_rows=None, block_classes=None):
    """inputs: (B, num_classes) float logits (f32 or bf16 -- cast happens in-kernel);
    targets: (B,) int class indices.  Returns mean loss (reduction=True) or (B,) losses.

    Note: out-of-range / negative targets contribute 0 to the target term (no error),
    which differs from PyTorch's scatter_ behavior.
    """
    B, K = inputs.shape
    assert K == num_classes, (K, num_classes)

    x = inputs                                   # keep original dtype; cast in-kernel
    t = targets.astype(jnp.int32).reshape(B, 1)

    itemsize = jnp.dtype(x.dtype).itemsize
    min_align = 16 if itemsize == 2 else 8
    kind = _tpu_kind()
    is_v7x = "v7" in kind
    # v7x: 64 MiB VMEM + 2 TCs  -> ~2.5 MiB tiles, force a multi-step grid.
    # v5e/v6e: 128 MiB VMEM, 1 TC -> ~6 MiB tiles to amortize per-step overhead.
    target_bytes = (5 << 19) if is_v7x else (6 << 20)
    min_tiles = 2 if is_v7x else 1

    # Large class axis: switch to the 2-D online-logsumexp kernel.
    use_split_k = block_classes is not None or K > 8192
    tk = K
    if use_split_k:
        tk = int(block_classes) if block_classes is not None else 2048
        tk = min(_round_up(tk, 128), _round_up(K, 128))
        if tk >= K:
            use_split_k = False
            tk = K

    if block_rows is not None:
        tb = _round_up(int(block_rows), min_align)
    else:
        tb = _choose_block_rows(B, tk * 4, min_align=min_align,
                                target_bytes=int(target_bytes), min_tiles=min_tiles)

    b_pad = _round_up(B, tb)
    if b_pad != B:
        x = jnp.pad(x, ((0, b_pad - B), (0, 0)))
        t = jnp.pad(t, ((0, b_pad - B), (0, 0)))

    # VMEM limit derived from the actual working set (double-buffered input + f32 temps),
    # clamped per generation instead of a hard-coded 32 MiB.
    in_blk = tb * tk * itemsize
    f32_blk = tb * tk * 4
    budget = 3 * in_blk + 3 * f32_blk + (4 << 20)
    cap = (40 << 20) if is_v7x else (100 << 20)
    vmem_limit = int(min(max(budget, 32 << 20), cap))

    if not use_split_k:
        kernel = functools.partial(_ce_full_k_kernel, epsilon=float(epsilon),
                                   num_classes=int(num_classes))
        loss_col = pl.pallas_call(
            kernel,
            out_shape=jax.ShapeDtypeStruct((b_pad, 1), jnp.float32),
            grid=(b_pad // tb,),
            in_specs=[pl.BlockSpec((tb, K), lambda i: (i, 0)),   # logits tile, full K
                      pl.BlockSpec((tb, 1), lambda i: (i, 0))],  # target indices
            out_specs=pl.BlockSpec((tb, 1), lambda i: (i, 0)),   # per-row losses
            compiler_params=pltpu.CompilerParams(
                dimension_semantics=("parallel",),
                vmem_limit_bytes=vmem_limit),
        )(x, t)
    else:
        k_pad = _round_up(K, tk)
        if k_pad != K:
            x = jnp.pad(x, ((0, 0), (0, k_pad - K)))             # masked in-kernel
        kernel = functools.partial(_ce_split_k_kernel, epsilon=float(epsilon),
                                   num_classes=int(num_classes))
        loss_col = pl.pallas_call(
            kernel,
            out_shape=jax.ShapeDtypeStruct((b_pad, 1), jnp.float32),
            grid=(b_pad // tb, k_pad // tk),
            in_specs=[pl.BlockSpec((tb, tk), lambda i, kk: (i, kk)),
                      pl.BlockSpec((tb, 1), lambda i, kk: (i, 0))],
            out_specs=pl.BlockSpec((tb, 1), lambda i, kk: (i, 0)),
            scratch_shapes=[pltpu.VMEM((tb, 1), jnp.float32)] * 4,
            compiler_params=pltpu.CompilerParams(
                dimension_semantics=("parallel", "arbitrary"),
                vmem_limit_bytes=vmem_limit),
        )(x, t)

    loss = loss_col[:B, 0]                       # drop padded rows
    if reduction:
        return jnp.mean(loss)                    # mean over the true batch only
    return loss


def _reference(inputs, targets, num_classes, epsilon=0.1, reduction=True):
    log_probs = jax.nn.log_softmax(inputs.astype(jnp.float32), axis=1)
    onehot = jax.nn.one_hot(targets, num_classes, dtype=jnp.float32)
    smooth = (1.0 - epsilon) * onehot + epsilon / num_classes
    loss = jnp.sum(-smooth * log_probs, axis=1)
    return jnp.mean(loss) if reduction else loss


if __name__ == "__main__":
    key = jax.random.PRNGKey(0)
    k1, k2, k3, k4, k5, k6 = jax.random.split(key, 6)
    epsilon = 0.1

    # --- Test 1: module's natural small shapes (single batch tile, f32) ---
    num_classes, batch = 16, 8
    logits = jax.random.normal(k1, (batch, num_classes), dtype=jnp.float32)
    tgts = jax.random.randint(k2, (batch,), 0, num_classes, dtype=jnp.int32)

    out = jax.block_until_ready(
        cross_entropy_label_smooth(logits, tgts, num_classes=num_classes,
                                   epsilon=epsilon, reduction=True))
    ref = _reference(logits, tgts, num_classes, epsilon, reduction=True)
    assert jnp.allclose(out, ref, atol=1e-5, rtol=1e-5), (out, ref)

    out_rows = jax.block_until_ready(
        cross_entropy_label_smooth(logits, tgts, num_classes=num_classes,
                                   epsilon=epsilon, reduction=False))
    ref_rows = _reference(logits, tgts, num_classes, epsilon, reduction=False)
    assert out_rows.shape == (batch,)
    assert jnp.allclose(out_rows, ref_rows, atol=1e-5, rtol=1e-5)

    # --- Test 2: multi-tile grid, batch padding, bf16 logits (in-kernel cast) ---
    nc2, b2 = 256, 200
    logits2 = jax.random.normal(k3, (b2, nc2), dtype=jnp.float32).astype(jnp.bfloat16)
    tgts2 = jax.random.randint(k4, (b2,), 0, nc2, dtype=jnp.int32)

    out2 = jax.block_until_ready(
        cross_entropy_label_smooth(logits2, tgts2, num_classes=nc2,
                                   epsilon=epsilon, reduction=True, block_rows=128))
    ref2 = _reference(logits2.astype(jnp.float32), tgts2, nc2, epsilon, reduction=True)
    assert jnp.allclose(out2, ref2, atol=1e-4, rtol=1e-4), (out2, ref2)

    out2_rows = jax.block_until_ready(
        cross_entropy_label_smooth(logits2, tgts2, num_classes=nc2,
                                   epsilon=epsilon, reduction=False, block_rows=128))
    ref2_rows = _reference(logits2.astype(jnp.float32), tgts2, nc2, epsilon,
                           reduction=False)
    assert out2_rows.shape == (b2,)
    assert jnp.allclose(out2_rows, ref2_rows, atol=1e-4, rtol=1e-4)

    # --- Test 3: split-K online-logsumexp path (K not a multiple of the K tile) ---
    nc3, b3 = 300, 24
    logits3 = jax.random.normal(k5, (b3, nc3), dtype=jnp.float32)
    tgts3 = jax.random.randint(k6, (b3,), 0, nc3, dtype=jnp.int32)

    out3 = jax.block_until_ready(
        cross_entropy_label_smooth(logits3, tgts3, num_classes=nc3,
                                   epsilon=epsilon, reduction=True,
                                   block_classes=128))
    ref3 = _reference(logits3, tgts3, nc3, epsilon, reduction=True)
    assert jnp.allclose(out3, ref3, atol=1e-4, rtol=1e-4), (out3, ref3)

    out3_rows = jax.block_until_ready(
        cross_entropy_label_smooth(logits3, tgts3, num_classes=nc3,
                                   epsilon=epsilon, reduction=False,
                                   block_classes=128))
    ref3_rows = _reference(logits3, tgts3, nc3, epsilon, reduction=False)
    assert out3_rows.shape == (b3,)
    assert jnp.allclose(out3_rows, ref3_rows, atol=1e-4, rtol=1e-4)

    print("KERNEL_OK")
</pallas_src>

<mosaic_0001>
module attributes {stable_mosaic.version = 11 : i64} {
  func.func @_ce_full_k_kernel(%arg0: i32, %arg1: memref<8x16xf32, #tpu.memory_space<vmem>>, %arg2: memref<8x1xi32, #tpu.memory_space<vmem>>, %arg3: memref<8x1xf32, #tpu.memory_space<vmem>>) attributes {dimension_semantics = [#tpu.dimension_semantics<parallel>], iteration_bounds = array<i64: 1>, scalar_prefetch = 0 : i64, scratch_operands = 0 : i64, tpu.core_type = #tpu.core_type<tc>, window_params = [{transform_indices = @transform_0, window_bounds = array<i64: 8, 16>}, {transform_indices = @transform_1, window_bounds = array<i64: 8, 1>}, {transform_indices = @transform_2, window_bounds = array<i64: 8, 1>}]} {
    %c0 = arith.constant 0 : index
    %c0_0 = arith.constant 0 : index
    %0 = vector.load %arg2[%c0, %c0_0] : memref<8x1xi32, #tpu.memory_space<vmem>>, vector<8x1xi32>
    %1 = tpu.iota {dimensions = array<i32: 1>} : vector<8x16xi32>
    %c0_1 = arith.constant 0 : index
    %c0_2 = arith.constant 0 : index
    %2 = vector.load %arg1[%c0_1, %c0_2] : memref<8x16xf32, #tpu.memory_space<vmem>>, vector<8x16xf32>
    %cst = arith.constant dense<0xFF800000> : vector<8xf32>
    %3 = vector.multi_reduction <maximumf>, %2, %cst [1] : vector<8x16xf32> to vector<8xf32>
    %4 = vector.shape_cast %3 : vector<8xf32> to vector<8x1xf32>
    %c0_3 = arith.constant 0 : index
    %c0_4 = arith.constant 0 : index
    %5 = vector.load %arg1[%c0_3, %c0_4] : memref<8x16xf32, #tpu.memory_space<vmem>>, vector<8x16xf32>
    %6 = vector.broadcast %4 : vector<8x1xf32> to vector<8x16xf32>
    %7 = arith.subf %5, %6 : vector<8x16xf32>
    %8 = math.exp %7 : vector<8x16xf32>
    %cst_5 = arith.constant dense<0.000000e+00> : vector<8xf32>
    %9 = vector.multi_reduction <add>, %8, %cst_5 [1] : vector<8x16xf32> to vector<8xf32>
    %10 = vector.shape_cast %9 : vector<8xf32> to vector<8x1xf32>
    %11 = math.log %10 : vector<8x1xf32>
    %c0_6 = arith.constant 0 : index
    %c0_7 = arith.constant 0 : index
    %12 = vector.load %arg1[%c0_6, %c0_7] : memref<8x16xf32, #tpu.memory_space<vmem>>, vector<8x16xf32>
    %cst_8 = arith.constant dense<0.000000e+00> : vector<8xf32>
    %13 = vector.multi_reduction <add>, %12, %cst_8 [1] : vector<8x16xf32> to vector<8xf32>
    %14 = vector.shape_cast %13 : vector<8xf32> to vector<8x1xf32>
    %15 = vector.broadcast %0 : vector<8x1xi32> to vector<8x16xi32>
    %16 = arith.cmpi eq, %1, %15 : vector<8x16xi32>
    %c0_9 = arith.constant 0 : index
    %c0_10 = arith.constant 0 : index
    %17 = vector.load %arg1[%c0_9, %c0_10] : memref<8x16xf32, #tpu.memory_space<vmem>>, vector<8x16xf32>
    %cst_11 = arith.constant 0.000000e+00 : f32
    %18 = vector.broadcast %cst_11 : f32 to vector<8x16xf32>
    %19 = arith.select %16, %17, %18 : vector<8x16xi1>, vector<8x16xf32>
    %cst_12 = arith.constant dense<0.000000e+00> : vector<8xf32>
    %20 = vector.multi_reduction <add>, %19, %cst_12 [1] : vector<8x16xf32> to vector<8xf32>
    %21 = vector.shape_cast %20 : vector<8xf32> to vector<8x1xf32>
    %22 = arith.addf %4, %11 : vector<8x1xf32>
    %23 = arith.subf %21, %22 : vector<8x1xf32>
    %cst_13 = arith.constant 1.600000e+01 : f32
    %24 = vector.broadcast %cst_13 : f32 to vector<8x1xf32>
    %25 = arith.mulf %24, %22 : vector<8x1xf32>
    %26 = arith.subf %14, %25 : vector<8x1xf32>
    %cst_14 = arith.constant -0.899999976 : f32
    %27 = vector.broadcast %cst_14 : f32 to vector<8x1xf32>
    %28 = arith.mulf %27, %23 : vector<8x1xf32>
    %cst_15 = arith.constant 6.250000e-03 : f32
    %29 = vector.broadcast %cst_15 : f32 to vector<8x1xf32>
    %30 = arith.mulf %29, %26 : vector<8x1xf32>
    %31 = arith.subf %28, %30 : vector<8x1xf32>
    %c0_16 = arith.constant 0 : index
    %c0_17 = arith.constant 0 : index
    %32 = vector.load %arg3[%c0_16, %c0_17] : memref<8x1xf32, #tpu.memory_space<vmem>>, vector<8x1xf32>
    tpu.vector_store %arg3[%c0_16, %c0_17], %31 {strides = array<i32>} : memref<8x1xf32, #tpu.memory_space<vmem>>, vector<8x1xf32>,
    return
  }
  func.func @transform_0(%arg0: i32) -> (i32, i32) {
    %c0_i32 = arith.constant 0 : i32
    %c0_i32_0 = arith.constant 0 : i32
    return %arg0, %c0_i32 : i32, i32
  }
  func.func @transform_1(%arg0: i32) -> (i32, i32) {
    %c0_i32 = arith.constant 0 : i32
    %c0_i32_0 = arith.constant 0 : i32
    return %arg0, %c0_i32 : i32, i32
  }
  func.func @transform_2(%arg0: i32) -> (i32, i32) {
    %c0_i32 = arith.constant 0 : i32
    %c0_i32_0 = arith.constant 0 : i32
    return %arg0, %c0_i32 : i32, i32
  }
}

</mosaic_0001>

<bundles_post_ra>
// kernel: tpu_custom_call.1
= control target key start
LH: loop header
LB: loop body
LE: loop exit
PB: predicated region body
PF: predicated region fallthrough
CT: control target
= control target key end

     0   :  { %vm15_vm0 = vcmask 130048   ;;  %v57_v1 = vmov 0   ;;  %v12_v7 = vlaneseq  ;;  %vm45_vm2 = vcmask 7168   ;;  %s86_s0 = inlined_call_operand.vmem [shape: f32[8,16], index: 0, kind: input, shape index: {}]   ;;  %s87_s1 = inlined_call_operand.vmem [shape: s32[8,1], index: 1, kind: input, shape index: {}]   ;;  %s88_s2 = inlined_call_operand.vmem [shape: f32[8,1], index: 2, kind: output, shape index: {}]  }
   0x1   :  { %v14_v0 = vld [vmem:[%s86_s0] sm:$0xff]  ;;  %52 = vset.pattern.permute.xlu0 %v57_v1 }
   0x2   :  { %v16_v2 = vsel %vm15_vm0, %v14_v0, -inf  ;;  %v11_v3 = vld [vmem:[%s87_s1] sm:$0xff]  ;;  %v13_v8 = vand.u32 127, %v12_v7  ;;  %v27_v12 = vsel %vm15_vm0, %v14_v0, 0.0 }
   0x3   :  { %17 = vmax.xlane.f32.xlu0 %v16_v2 }
  0x19   :  { %31 = vperm.xlu0 %52, %v11_v3  }
  0x8c   :  { %v18_v4 = vpop.xlane.xlu0 %17 }
  0x8d   :  { %v19_v5 = vsub.f32 %v14_v0, %v18_v4 }
  0x8f   :  { %v20_v6 = vmul.f32 1.442695, %v19_v5 }
  0x91   :  { %53 = vpow2.f32 %v20_v6 }
  0x94   :  { %v32_v9 = vpop.permute.xlu0 %31 }
  0x95   :  { %vm33_vm1 = vcmp.eq.s32.totalorder %v13_v8, %v32_v9 }
  0x96   :  { %v34_v13 = vsel %vm33_vm1, %v14_v0, 0.0 }
  0x97   :  { %v35_v14 = vsel %vm15_vm0, %v34_v13, 0.0 }
  0x9e   :  { %v54_v10 = vpop.eup %53 }
  0x9f   :  { %v22_v11 = vsel %vm15_vm0, %v54_v10, 0.0 }
  0xa0   :  { %23 = vadd.xlane.f32.xlu1 %v22_v11 }
  0xa4   :  { %28 = vadd.xlane.f32.xlu1 %v27_v12 }
  0xa8   :  { %36 = vadd.xlane.f32.xlu1 %v35_v14 }
 0x129   :  { %v24_v15 = vpop.xlane.xlu1 %23 }
 0x12a   :  { %55 = vlog2.f32 %v24_v15 }
 0x12d   :  { %v29_v16 = vpop.xlane.xlu1 %28 }
 0x131   :  { %v37_v19 = vpop.xlane.xlu1 %36 }
 0x137   :  { %v56_v17 = vpop.eup %55 }
 0x138   :  { %v26_v18 = vmul.f32 0.6931472, %v56_v17 }
 0x13a   :  { %v38_v20 = vadd.f32 %v26_v18, %v18_v4 }
 0x13c   :  { %v40_v21 = vmul.f32 16.0, %v38_v20  ;;  %v39_v22 = vsub.f32 %v37_v19, %v38_v20 }
 0x13e   :  { %v41_v23 = vsub.f32 %v29_v16, %v40_v21  ;;  %v42_v25 = vmul.f32 -0.9, %v39_v22 }
 0x140   :  { %v43_v24 = vmul.f32 0.00625, %v41_v23 }
 0x142   :  { %v44_v26 = vsub.f32 %v42_v25, %v43_v24 }
 0x144   :  { %46 = vst.msk [vmem:[%s88_s2] sm:$0xff] %vm45_vm2, %v44_v26 }

</bundles_post_ra>
